<compile_context>
chip_gen: v5e
topology: v5e:2x2
jax: 0.10.0
libtpu: 0.0.40
codegen_flags: <defaults>
</compile_context>

<pallas_src>
import functools

import jax
import jax.numpy as jnp
from jax.experimental import pallas as pl
from jax.experimental.pallas import tpu as pltpu


def _round_up(x, m):
    return -(-x // m) * m


def _num_tensorcores():
    """Best-effort TensorCore-per-chip query.  Falls back to 1 (single-block
    path), which is always correct and is the right perf choice on v5e/v6e."""
    try:
        info = pltpu.get_tpu_info()
        for attr in ("num_tensorcores", "tensorcore_count", "num_cores",
                     "cores_per_chip", "tensorcores_per_chip"):
            v = getattr(info, attr, None)
            if v:
                return max(1, int(v))
    except Exception:
        pass
    try:
        return max(1, int(getattr(jax.devices()[0], "num_cores", 1)))
    except Exception:
        return 1


def _orthogonal(key, out_dim, in_dim, gain=1.0, dtype=jnp.float32):
    """Orthogonal init matching torch.nn.init.orthogonal_ on a [out_dim, in_dim]
    matrix, returned transposed as [in_dim, out_dim] (x @ W layout)."""
    rows, cols = out_dim, in_dim
    flat = jax.random.normal(key, (max(rows, cols), min(rows, cols)), dtype=jnp.float32)
    q, r = jnp.linalg.qr(flat)
    d = jnp.diagonal(r)
    q = q * jnp.where(d == 0, 1.0, jnp.sign(d))   # sign fix (safe at d==0)
    if rows < cols:
        q = q.T
    w = gain * q[:rows, :cols]                    # [out_dim, in_dim]
    return w.T.astype(dtype)                      # [in_dim, out_dim]


def make_params(key, state_dim, hidden_width, action_dim, dtype=jnp.float32):
    k1, k2, k3 = jax.random.split(key, 3)
    w1 = _orthogonal(k1, hidden_width, state_dim, gain=1.0, dtype=dtype)     # [S, H]
    b1 = jnp.zeros((1, hidden_width), dtype)
    w2 = _orthogonal(k2, hidden_width, hidden_width, gain=1.0, dtype=dtype)  # [H, H]
    b2 = jnp.zeros((1, hidden_width), dtype)
    w3 = _orthogonal(k3, action_dim, hidden_width, gain=0.01, dtype=dtype)   # [H, A]
    b3 = jnp.zeros((1, action_dim), dtype)
    return (w1, b1, w2, b2, w3, b3)


def pack_params(params):
    """Pack (W1,b1,W2,b2,W3,b3) into one [3, rows, lane] f32 slab.

    Layer l lives at slab[l]:
      rows [0 : in_dim_l)  -> weight (x @ W layout), zero-padded to `lane` cols
      row  bias_row        -> bias (zero-padded to `lane` cols)
    rows is padded up to a multiple of 8 (sublane tile)."""
    w1, b1, w2, b2, w3, b3 = params
    S, H = w1.shape
    A = w3.shape[1]
    assert A <= H, "packing assumes action_dim <= hidden_width"
    lane = H
    bias_row = max(S, H)
    rows = _round_up(bias_row + 1, 8)
    slab = jnp.zeros((3, rows, lane), jnp.float32)
    slab = slab.at[0, :S, :H].set(w1)
    slab = slab.at[0, bias_row, :H].set(b1.reshape(-1))
    slab = slab.at[1, :H, :H].set(w2)
    slab = slab.at[1, bias_row, :H].set(b2.reshape(-1))
    slab = slab.at[2, :H, :A].set(w3)
    slab = slab.at[2, bias_row, :A].set(b3.reshape(-1))
    meta = dict(state_dim=S, hidden_width=H, action_dim=A,
                bias_row=bias_row, lane=lane)
    return slab, meta


def actor_gaussian_kernel(s_ref, p_ref, o_ref, *, max_action, state_dim,
                          hidden_width, bias_row):
    x = s_ref[...]                                           # [tile_B, S]
    b1 = p_ref[0, bias_row:bias_row + 1, :]                  # [1, lane]
    b2 = p_ref[1, bias_row:bias_row + 1, :]
    b3 = p_ref[2, bias_row:bias_row + 1, :]
    h1 = jnp.tanh(
        jnp.dot(x, p_ref[0, :state_dim, :],
                preferred_element_type=jnp.float32) + b1)
    h2 = jnp.tanh(
        jnp.dot(h1, p_ref[1, :hidden_width, :],
                preferred_element_type=jnp.float32) + b2)
    mean = max_action * jnp.tanh(
        jnp.dot(h2, p_ref[2, :hidden_width, :],
                preferred_element_type=jnp.float32) + b3)
    o_ref[...] = mean.astype(o_ref.dtype)                    # padded lanes stay 0


def actor_gaussian_forward(s, packed, meta, max_action, *, num_cores=None,
                           min_core_tile=256):
    """s: [B, state_dim] f32. Returns mean: [B, action_dim] f32."""
    B, S = s.shape
    assert S == meta["state_dim"]
    H, A = meta["hidden_width"], meta["action_dim"]
    lane, bias_row = meta["lane"], meta["bias_row"]

    if num_cores is None:
        num_cores = _num_tensorcores()

    kernel = functools.partial(
        actor_gaussian_kernel, max_action=float(max_action),
        state_dim=S, hidden_width=H, bias_row=bias_row)

    flops = 2 * B * (S * H + H * H + H * lane)
    transcendentals = B * (2 * H + A)
    bytes_accessed = 4 * (s.size + packed.size + B * lane)
    cost = pl.CostEstimate(flops=flops, transcendentals=transcendentals,
                           bytes_accessed=bytes_accessed)

    # Grid path ONLY for multi-TensorCore chips (v7x): the grid is a serial
    # loop on 1-TC chips and would just add per-step overhead there.
    use_grid = (num_cores >= 2
                and B >= num_cores * min_core_tile
                and B % (8 * num_cores) == 0)

    if use_grid:
        # Balanced split: exactly one equal tile per TensorCore.
        batch_tile = B // num_cores
        grid = (num_cores,)
        in_specs = [
            pl.BlockSpec((batch_tile, S), lambda i: (i, 0)),
            # Constant index_map: slab is fetched once; single-buffer it.
            pl.BlockSpec(packed.shape, lambda i: (0, 0, 0),
                         pipeline_mode=pl.Buffered(1)),
        ]
        out_specs = pl.BlockSpec((batch_tile, lane), lambda i: (i, 0))
        cparams = pltpu.CompilerParams(dimension_semantics=("parallel",))
    else:
        # Single fused block: 3 DMAs total, no grid/pipeline overhead.
        grid = ()
        in_specs = [
            pl.BlockSpec((B, S), lambda: (0, 0)),
            pl.BlockSpec(packed.shape, lambda: (0, 0, 0)),
        ]
        out_specs = pl.BlockSpec((B, lane), lambda: (0, 0))
        cparams = pltpu.CompilerParams()

    out = pl.pallas_call(
        kernel,
        out_shape=jax.ShapeDtypeStruct((B, lane), jnp.float32),
        grid=grid,
        in_specs=in_specs,
        out_specs=out_specs,
        compiler_params=cparams,
        cost_estimate=cost,
    )(s, packed)
    # Cheap lane slice (padded lanes are exactly tanh(0)=0).  A consumer that
    # can use the padded [B, lane] slab directly may skip this op.
    return out[:, :A]


def reference_forward(s, params, max_action):
    w1, b1, w2, b2, w3, b3 = params
    h1 = jnp.tanh(s @ w1 + b1)
    h2 = jnp.tanh(h1 @ w2 + b2)
    return max_action * jnp.tanh(h2 @ w3 + b3)


if __name__ == "__main__":
    state_dim, hidden_width, action_dim = 16, 32, 4
    max_action = 2.0

    key = jax.random.PRNGKey(0)
    k_params, k_s1, k_s2 = jax.random.split(key, 3)

    params = make_params(k_params, state_dim, hidden_width, action_dim)
    packed, meta = pack_params(params)

    # Small batch: single fused block on every chip.
    s_small = jax.random.normal(k_s1, (8, state_dim), dtype=jnp.float32)
    mean_small = jax.block_until_ready(
        actor_gaussian_forward(s_small, packed, meta, max_action))
    ref_small = reference_forward(s_small, params, max_action)
    assert mean_small.shape == (8, action_dim)
    assert jnp.allclose(mean_small, ref_small, atol=1e-5, rtol=1e-5), \
        "small-batch mismatch vs JAX reference"

    # Larger batch: still a single block on v5e/v6e (1 TC); balanced 2-tile
    # split only if the chip reports >= 2 TensorCores (v7x).
    s_big = jax.random.normal(k_s2, (512, state_dim), dtype=jnp.float32)
    mean_big = jax.block_until_ready(
        actor_gaussian_forward(s_big, packed, meta, max_action))
    ref_big = reference_forward(s_big, params, max_action)
    assert mean_big.shape == (512, action_dim)
    assert jnp.allclose(mean_big, ref_big, atol=1e-5, rtol=1e-5), \
        "large-batch mismatch vs JAX reference"

    # TODO(synk): get_dist()'s Normal(mean, exp(log_std)) is distribution-object
    # construction (log_std zero-init => std == 1), not tensor compute; fusing
    # std/eps sampling into this call would only shave adjacent op launches.
    print("KERNEL_OK")
</pallas_src>

<mosaic_0001>
module attributes {stable_mosaic.version = 11 : i64} {
  func.func @actor_gaussian_kernel(%arg0: memref<8x16xf32, #tpu.memory_space<vmem>>, %arg1: memref<3x40x32xf32, #tpu.memory_space<vmem>>, %arg2: memref<8x32xf32, #tpu.memory_space<vmem>>) attributes {dimension_semantics = [], scalar_prefetch = 0 : i64, scratch_operands = 0 : i64, tpu.core_type = #tpu.core_type<tc>} {
    %c0 = arith.constant 0 : index
    %c0_0 = arith.constant 0 : index
    %0 = vector.load %arg0[%c0, %c0_0] : memref<8x16xf32, #tpu.memory_space<vmem>>, vector<8x16xf32>
    %c0_1 = arith.constant 0 : index
    %c32 = arith.constant 32 : index
    %c0_2 = arith.constant 0 : index
    %1 = vector.load %arg1[%c0_1, %c32, %c0_2] : memref<3x40x32xf32, #tpu.memory_space<vmem>>, vector<1x1x32xf32>
    %2 = vector.shape_cast %1 : vector<1x1x32xf32> to vector<1x32xf32>
    %c1 = arith.constant 1 : index
    %c32_3 = arith.constant 32 : index
    %c0_4 = arith.constant 0 : index
    %3 = vector.load %arg1[%c1, %c32_3, %c0_4] : memref<3x40x32xf32, #tpu.memory_space<vmem>>, vector<1x1x32xf32>
    %4 = vector.shape_cast %3 : vector<1x1x32xf32> to vector<1x32xf32>
    %c2 = arith.constant 2 : index
    %c32_5 = arith.constant 32 : index
    %c0_6 = arith.constant 0 : index
    %5 = vector.load %arg1[%c2, %c32_5, %c0_6] : memref<3x40x32xf32, #tpu.memory_space<vmem>>, vector<1x1x32xf32>
    %6 = vector.shape_cast %5 : vector<1x1x32xf32> to vector<1x32xf32>
    %c0_7 = arith.constant 0 : index
    %c0_8 = arith.constant 0 : index
    %c0_9 = arith.constant 0 : index
    %7 = vector.load %arg1[%c0_7, %c0_8, %c0_9] : memref<3x40x32xf32, #tpu.memory_space<vmem>>, vector<1x16x32xf32>
    %8 = vector.shape_cast %7 : vector<1x16x32xf32> to vector<16x32xf32>
    %cst = arith.constant dense<0.000000e+00> : vector<8x32xf32>
    %9 = tpu.matmul %0, %8, %cst {dimension_numbers = #tpu.dot_dimension_numbers<[1], [0], [0], [1], [0, 0, 1, 1], [], []>} : vector<8x16xf32>, vector<16x32xf32>, vector<8x32xf32> -> vector<8x32xf32>
    %10 = vector.broadcast %2 : vector<1x32xf32> to vector<8x32xf32>
    %11 = arith.addf %9, %10 : vector<8x32xf32>
    %12 = math.tanh %11 : vector<8x32xf32>
    %c1_10 = arith.constant 1 : index
    %c0_11 = arith.constant 0 : index
    %c0_12 = arith.constant 0 : index
    %13 = vector.load %arg1[%c1_10, %c0_11, %c0_12] : memref<3x40x32xf32, #tpu.memory_space<vmem>>, vector<1x32x32xf32>
    %14 = vector.shape_cast %13 : vector<1x32x32xf32> to vector<32x32xf32>
    %cst_13 = arith.constant dense<0.000000e+00> : vector<8x32xf32>
    %15 = tpu.matmul %12, %14, %cst_13 {dimension_numbers = #tpu.dot_dimension_numbers<[1], [0], [0], [1], [0, 0, 1, 1], [], []>} : vector<8x32xf32>, vector<32x32xf32>, vector<8x32xf32> -> vector<8x32xf32>
    %16 = vector.broadcast %4 : vector<1x32xf32> to vector<8x32xf32>
    %17 = arith.addf %15, %16 : vector<8x32xf32>
    %18 = math.tanh %17 : vector<8x32xf32>
    %c2_14 = arith.constant 2 : index
    %c0_15 = arith.constant 0 : index
    %c0_16 = arith.constant 0 : index
    %19 = vector.load %arg1[%c2_14, %c0_15, %c0_16] : memref<3x40x32xf32, #tpu.memory_space<vmem>>, vector<1x32x32xf32>
    %20 = vector.shape_cast %19 : vector<1x32x32xf32> to vector<32x32xf32>
    %cst_17 = arith.constant dense<0.000000e+00> : vector<8x32xf32>
    %21 = tpu.matmul %18, %20, %cst_17 {dimension_numbers = #tpu.dot_dimension_numbers<[1], [0], [0], [1], [0, 0, 1, 1], [], []>} : vector<8x32xf32>, vector<32x32xf32>, vector<8x32xf32> -> vector<8x32xf32>
    %22 = vector.broadcast %6 : vector<1x32xf32> to vector<8x32xf32>
    %23 = arith.addf %21, %22 : vector<8x32xf32>
    %24 = math.tanh %23 : vector<8x32xf32>
    %cst_18 = arith.constant 2.000000e+00 : f32
    %25 = vector.broadcast %cst_18 : f32 to vector<8x32xf32>
    %26 = arith.mulf %25, %24 : vector<8x32xf32>
    %c0_19 = arith.constant 0 : index
    %c0_20 = arith.constant 0 : index
    %27 = vector.load %arg2[%c0_19, %c0_20] : memref<8x32xf32, #tpu.memory_space<vmem>>, vector<8x32xf32>
    tpu.vector_store %arg2[%c0_19, %c0_20], %26 {strides = array<i32>} : memref<8x32xf32, #tpu.memory_space<vmem>>, vector<8x32xf32>,
    return
  }
}

</mosaic_0001>

<bundles_post_ra>
// kernel: tpu_custom_call.1
= control target key start
LH: loop header
LB: loop body
LE: loop exit
PB: predicated region body
PF: predicated region fallthrough
CT: control target
= control target key end

     0   :  { %vm21_vm0 = vcmask 130048   ;;  %s236_s0 = inlined_call_operand.vmem [shape: f32[8,16], index: 0, kind: input, shape index: {}]   ;;  %s237_s1 = inlined_call_operand.vmem [shape: f32[3,40,32], index: 1, kind: input, shape index: {}]   ;;  %s238_s2 = inlined_call_operand.hbm [shape: f32[8,32], index: 2, kind: output, shape index: {}]  }
   0x1   :  { %v19_v0 = vld [vmem:[%s237_s1 + $0x8] sm:$0xff]  ;;  %v18_v1 = vld [vmem:[%s237_s1] sm:$0xff] }
   0x2   :  { %39 = vmatpush.msra.mxu0 %v19_v0  ;;  %v12_v2 = vld [vmem:[%s236_s0] sm:$0xff] }
   0x3   :  { %7 = vsyncpa [#allocation3], 0  ;;  %v129_v3 = vld [vmem:[%s237_s1 + $0x40] sm:$0xff]  ;;  %v128_v4 = vld [vmem:[%s237_s1 + $0x38] sm:$0xff]  ;;  %vm51_vm1 = vcmask 261120   ;;  %s172_s8 = smov [#allocation2]  }
   0x4   :  { %40 = vmatpush.msra.mxu0 %v18_v1  ;;  %67 = vmatpush.msra.mxu1 %v129_v3  ;;  %v127_v5 = vld [vmem:[%s237_s1 + $0x30] sm:$0xff]  ;;  %v126_v6 = vld [vmem:[%s237_s1 + $0x28] sm:$0xff]  ;;  %v137_v7 = vld [vmem:[%s237_s1 + $0x20] ss:$0 sm:$0xff]  ;;  %s112_s9 = sshll.u32 %s172_s8, 4  ;;  %s114_s12 = sshll.u32 %s238_s2, 4  ;;  %s113_s9 = int_to_ptr.vmem [resolvable:$true] %s112_s9  ;;  %s115_s12 = int_to_ptr.hbm [resolvable:$true] %s114_s12 }
   0x5   :  { %125 = vmatmul.msk.f32.vlgmr.msra.gmra.mxu0 %vm21_vm0, %v12_v2  ;;  %v134_v11 = vld [vmem:[%s237_s1 + $0x68] sm:$0xff]  ;;  %v133_v12 = vld [vmem:[%s237_s1 + $0x60] sm:$0xff]  ;;  %v132_v13 = vld [vmem:[%s237_s1 + $0x58] sm:$0xff] }
   0x6   :  { %68 = vmatpush.msra.mxu1 %v128_v4  ;;  %96 = vmatpush.msra.mxu2 %v134_v11  ;;  %v131_v14 = vld [vmem:[%s237_s1 + $0x50] sm:$0xff]  ;;  %v138_v15 = vld [vmem:[%s237_s1 + $0x48] ss:$0 sm:$0xff] }
   0x7   :  { %v139_v19 = vld [vmem:[%s237_s1 + $0x70] ss:$0 sm:$0xff] }
   0x8   :  { %69 = vmatpush.msra.mxu1 %v127_v5  ;;  %97 = vmatpush.msra.mxu2 %v133_v12 }
   0xa   :  { %70 = vmatpush.msra.mxu1 %v126_v6  ;;  %98 = vmatpush.msra.mxu2 %v132_v13 }
   0xc   :  { %99 = vmatpush.msra.mxu2 %v131_v14 }
  0x82   :  { %v42_v8 = vpop.f32.mrf.mxu0 }
  0x83   :  { %v43_v9 = vadd.f32 %v137_v7, %v42_v8 }
  0x85   :  { %140 = vtanh.f32 %v43_v9 }
  0x8b   :  { %v141_v10 = vpop.eup %140 }
  0x8c   :  { %130 = vmatmul.msk.f32.vlgmr.msra.gmra.mxu1 %vm51_vm1, %v141_v10 }
 0x109   :  { %v72_v16 = vpop.f32.mrf.mxu1 }
 0x10a   :  { %v73_v17 = vadd.f32 %v138_v15, %v72_v16 }
 0x10c   :  { %142 = vtanh.f32 %v73_v17 }
 0x112   :  { %v143_v18 = vpop.eup %142 }
 0x113   :  { %135 = vmatmul.msk.f32.vlgmr.msra.gmra.mxu2 %vm51_vm1, %v143_v18 }
 0x196   :  { %v101_v20 = vpop.f32.mrf.mxu2 }
 0x197   :  { %v102_v21 = vadd.f32 %v139_v19, %v101_v20 }
 0x199   :  { %144 = vtanh.f32 %v102_v21 }
 0x19f   :  { %v145_v22 = vpop.eup %144 }
 0x1a0   :  { %v105_v23 = vmul.f32 2.0, %v145_v22 }
 0x1a2   :  { %106 = vst.msk [vmem:[#allocation2] sm:$0xff] %vm51_vm1, %v105_v23 }
 0x1a3   :  { %117 = dma.vmem_to_hbm [thread:$0]  %s113_s9, 128, %s115_s12, [#allocation3]  }
 0x1a4   :  { %170 = dma.done.wait [#allocation3], 128  }
 0x1a5   :  { %171 = vsyncadd [#allocation3], 4294967168 }
 0x1a6   :  { %122 = vsyncpa [#allocation3], 1 }

</bundles_post_ra>
